<compile_context>
chip_gen: v5e
topology: v5e:2x2
jax: 0.10.0
libtpu: 0.0.40
codegen_flags: <defaults>
</compile_context>

<pallas_src>
import jax
import jax.numpy as jnp
from jax.experimental import pallas as pl
from jax.experimental.pallas import tpu as pltpu


def _round_up(n: int, m: int) -> int:
    return ((n + m - 1) // m) * m


def ffpolicy_kernel(xT_ref, w1_ref, b1_ref, w2_ref, b2_ref, w3_ref, b3_ref, o_ref):
    # Feature-major tile: xT (D, TM), activations (H, TM), output (C, TM).
    xT = xT_ref[...]

    # ff_1 (norm already folded into w1) + ReLU
    h1 = jnp.dot(w1_ref[...], xT, preferred_element_type=jnp.float32) + b1_ref[...]
    h1 = jnp.maximum(h1, 0.0)                                  # (H, TM)

    # ff_2 + ReLU
    h2 = jnp.dot(w2_ref[...], h1, preferred_element_type=jnp.float32) + b2_ref[...]
    h2 = jnp.maximum(h2, 0.0)                                  # (H, TM)

    # ff_3 + log_softmax over the 2 classes, written as explicit logaddexp so the
    # reduction stays elementwise on lane-dense (1, TM) rows (no cross-lane XLU op).
    logits = jnp.dot(w3_ref[...], h2, preferred_element_type=jnp.float32) + b3_ref[...]
    l0 = logits[0:1, :]
    l1 = logits[1:2, :]
    m = jnp.maximum(l0, l1)
    lse = m + jnp.log(jnp.exp(l0 - m) + jnp.exp(l1 - m))       # (1, TM)
    o_ref[...] = logits - lse                                  # (C, TM), full-lane stores


def ffpolicy_forward(x, norm_tensor, params, tm=4096):
    """x: (B, inp_dim) f32; norm_tensor: (inp_dim,) f32; params in PyTorch (out, in) layout."""
    B, D = x.shape
    w1, b1, w2, b2, w3, b3 = params          # w1 (H, D), w2 (H, H), w3 (C, H)
    H = w1.shape[0]
    C = w3.shape[0]

    # Fold the normalization into W1 (exact algebraic identity, done once host-side).
    w1s = (w1 / norm_tensor[None, :]).astype(jnp.float32)

    # Column-vector biases for the feature-major layout.
    b1c = b1.reshape(H, 1)
    b2c = b2.reshape(H, 1)
    b3c = b3.reshape(C, 1)

    # Batch on the lane axis; pad batch to a multiple of the tile (>=128 lanes).
    tm = min(tm, _round_up(B, 128))
    B_pad = _round_up(B, tm)
    xT = jnp.zeros((D, B_pad), jnp.float32).at[:, :B].set(x.T.astype(jnp.float32))

    grid = (B_pad // tm,)
    n_flops = 2 * B_pad * (D * H + H * H + H * C)
    n_bytes = 4 * (B_pad * (D + C) + w1s.size + w2.size + w3.size + 2 * H + C)

    out_t = pl.pallas_call(
        ffpolicy_kernel,
        out_shape=jax.ShapeDtypeStruct((C, B_pad), jnp.float32),
        grid=grid,
        in_specs=[
            pl.BlockSpec((D, tm), lambda i: (0, i)),     # x tile, streamed per grid step
            pl.BlockSpec((H, D), lambda i: (0, 0)),      # weights/biases stay resident
            pl.BlockSpec((H, 1), lambda i: (0, 0)),
            pl.BlockSpec((H, H), lambda i: (0, 0)),
            pl.BlockSpec((H, 1), lambda i: (0, 0)),
            pl.BlockSpec((C, H), lambda i: (0, 0)),
            pl.BlockSpec((C, 1), lambda i: (0, 0)),
        ],
        out_specs=pl.BlockSpec((C, tm), lambda i: (0, i)),
        compiler_params=pltpu.CompilerParams(
            dimension_semantics=("parallel",)),          # v7x: shard batch over both TCs
        cost_estimate=pl.CostEstimate(
            flops=n_flops, transcendentals=3 * B_pad, bytes_accessed=n_bytes),
    )(xT, w1s, b1c, w2, b2c, w3, b3c)

    # Back to the PyTorch-facing (B, C) layout, dropping the batch padding.
    return out_t[:, :B].T


def init_params(key, inp_dim, hidden=32, out_dim=2):
    """Deterministic synthetic init; weights kept in PyTorch nn.Linear (out, in) layout."""
    ks = jax.random.split(key, 6)
    s1 = 1.0 / jnp.sqrt(inp_dim)
    s2 = 1.0 / jnp.sqrt(hidden)
    w1 = jax.random.uniform(ks[0], (hidden, inp_dim), jnp.float32, -s1, s1)
    b1 = jax.random.uniform(ks[1], (hidden,), jnp.float32, -s1, s1)
    w2 = jax.random.uniform(ks[2], (hidden, hidden), jnp.float32, -s2, s2)
    b2 = jax.random.uniform(ks[3], (hidden,), jnp.float32, -s2, s2)
    w3 = jax.random.uniform(ks[4], (out_dim, hidden), jnp.float32, -s2, s2)
    b3 = jax.random.uniform(ks[5], (out_dim,), jnp.float32, -s2, s2)
    return (w1, b1, w2, b2, w3, b3)


def ffpolicy_ref(x, norm_tensor, params):
    """Pure-JAX reference (PyTorch (out, in) weight layout)."""
    w1, b1, w2, b2, w3, b3 = params
    x = x / norm_tensor
    x = jnp.maximum(x @ w1.T + b1, 0.0)
    x = jnp.maximum(x @ w2.T + b2, 0.0)
    logits = x @ w3.T + b3
    return jax.nn.log_softmax(logits, axis=1)


if __name__ == "__main__":
    key = jax.random.PRNGKey(0)
    k_x, k_x2, k_p = jax.random.split(key, 3)

    INP_DIM = 8
    norm_tensor = jnp.arange(1, INP_DIM + 1, dtype=jnp.float32)  # len == inp_dim
    params = init_params(k_p, INP_DIM)

    # Small case (single grid step, batch padded to 128 lanes).
    B = 4
    x = jax.random.normal(k_x, (B, INP_DIM), dtype=jnp.float32)
    out = jax.block_until_ready(ffpolicy_forward(x, norm_tensor, params))
    ref = ffpolicy_ref(x, norm_tensor, params)
    assert out.shape == (B, 2)
    assert jnp.allclose(out, ref, atol=1e-5, rtol=1e-5), "mismatch vs reference (B=4)"

    # Non-multiple batch to exercise the tiled grid + padding path (tm=128 -> 3 steps).
    B2 = 300
    x2 = jax.random.normal(k_x2, (B2, INP_DIM), dtype=jnp.float32)
    out2 = jax.block_until_ready(ffpolicy_forward(x2, norm_tensor, params, tm=128))
    ref2 = ffpolicy_ref(x2, norm_tensor, params)
    assert out2.shape == (B2, 2)
    assert jnp.allclose(out2, ref2, atol=1e-5, rtol=1e-5), "mismatch vs reference (B=300)"

    print("KERNEL_OK")
</pallas_src>

<mosaic_0001>
module attributes {stable_mosaic.version = 11 : i64} {
  func.func @ffpolicy_kernel(%arg0: i32, %arg1: memref<8x128xf32, #tpu.memory_space<vmem>>, %arg2: memref<32x8xf32, #tpu.memory_space<vmem>>, %arg3: memref<32x1xf32, #tpu.memory_space<vmem>>, %arg4: memref<32x32xf32, #tpu.memory_space<vmem>>, %arg5: memref<32x1xf32, #tpu.memory_space<vmem>>, %arg6: memref<2x32xf32, #tpu.memory_space<vmem>>, %arg7: memref<2x1xf32, #tpu.memory_space<vmem>>, %arg8: memref<2x128xf32, #tpu.memory_space<vmem>>) attributes {dimension_semantics = [#tpu.dimension_semantics<parallel>], iteration_bounds = array<i64: 1>, scalar_prefetch = 0 : i64, scratch_operands = 0 : i64, tpu.core_type = #tpu.core_type<tc>, window_params = [{transform_indices = @transform_0, window_bounds = array<i64: 8, 128>}, {pipeline_mode = #tpu.pipeline_mode<synchronous>, transform_indices = @transform_1, window_bounds = array<i64: 32, 8>}, {pipeline_mode = #tpu.pipeline_mode<synchronous>, transform_indices = @transform_2, window_bounds = array<i64: 32, 1>}, {pipeline_mode = #tpu.pipeline_mode<synchronous>, transform_indices = @transform_3, window_bounds = array<i64: 32, 32>}, {pipeline_mode = #tpu.pipeline_mode<synchronous>, transform_indices = @transform_4, window_bounds = array<i64: 32, 1>}, {pipeline_mode = #tpu.pipeline_mode<synchronous>, transform_indices = @transform_5, window_bounds = array<i64: 2, 32>}, {pipeline_mode = #tpu.pipeline_mode<synchronous>, transform_indices = @transform_6, window_bounds = array<i64: 2, 1>}, {transform_indices = @transform_7, window_bounds = array<i64: 2, 128>}]} {
    %c0 = arith.constant 0 : index
    %c0_0 = arith.constant 0 : index
    %0 = vector.load %arg1[%c0, %c0_0] : memref<8x128xf32, #tpu.memory_space<vmem>>, vector<8x128xf32>
    %c0_1 = arith.constant 0 : index
    %c0_2 = arith.constant 0 : index
    %1 = vector.load %arg2[%c0_1, %c0_2] : memref<32x8xf32, #tpu.memory_space<vmem>>, vector<32x8xf32>
    %cst = arith.constant dense<0.000000e+00> : vector<32x128xf32>
    %2 = tpu.matmul %1, %0, %cst {dimension_numbers = #tpu.dot_dimension_numbers<[1], [0], [0], [1], [0, 0, 1, 1], [], []>} : vector<32x8xf32>, vector<8x128xf32>, vector<32x128xf32> -> vector<32x128xf32>
    %c0_3 = arith.constant 0 : index
    %c0_4 = arith.constant 0 : index
    %3 = vector.load %arg3[%c0_3, %c0_4] : memref<32x1xf32, #tpu.memory_space<vmem>>, vector<32x1xf32>
    %4 = vector.broadcast %3 : vector<32x1xf32> to vector<32x128xf32>
    %5 = arith.addf %2, %4 : vector<32x128xf32>
    %cst_5 = arith.constant 0.000000e+00 : f32
    %6 = vector.broadcast %cst_5 : f32 to vector<32x128xf32>
    %7 = arith.maximumf %5, %6 : vector<32x128xf32>
    %c0_6 = arith.constant 0 : index
    %c0_7 = arith.constant 0 : index
    %8 = vector.load %arg4[%c0_6, %c0_7] : memref<32x32xf32, #tpu.memory_space<vmem>>, vector<32x32xf32>
    %cst_8 = arith.constant dense<0.000000e+00> : vector<32x128xf32>
    %9 = tpu.matmul %8, %7, %cst_8 {dimension_numbers = #tpu.dot_dimension_numbers<[1], [0], [0], [1], [0, 0, 1, 1], [], []>} : vector<32x32xf32>, vector<32x128xf32>, vector<32x128xf32> -> vector<32x128xf32>
    %c0_9 = arith.constant 0 : index
    %c0_10 = arith.constant 0 : index
    %10 = vector.load %arg5[%c0_9, %c0_10] : memref<32x1xf32, #tpu.memory_space<vmem>>, vector<32x1xf32>
    %11 = vector.broadcast %10 : vector<32x1xf32> to vector<32x128xf32>
    %12 = arith.addf %9, %11 : vector<32x128xf32>
    %cst_11 = arith.constant 0.000000e+00 : f32
    %13 = vector.broadcast %cst_11 : f32 to vector<32x128xf32>
    %14 = arith.maximumf %12, %13 : vector<32x128xf32>
    %c0_12 = arith.constant 0 : index
    %c0_13 = arith.constant 0 : index
    %15 = vector.load %arg6[%c0_12, %c0_13] : memref<2x32xf32, #tpu.memory_space<vmem>>, vector<2x32xf32>
    %cst_14 = arith.constant dense<0.000000e+00> : vector<2x128xf32>
    %16 = tpu.matmul %15, %14, %cst_14 {dimension_numbers = #tpu.dot_dimension_numbers<[1], [0], [0], [1], [0, 0, 1, 1], [], []>} : vector<2x32xf32>, vector<32x128xf32>, vector<2x128xf32> -> vector<2x128xf32>
    %c0_15 = arith.constant 0 : index
    %c0_16 = arith.constant 0 : index
    %17 = vector.load %arg7[%c0_15, %c0_16] : memref<2x1xf32, #tpu.memory_space<vmem>>, vector<2x1xf32>
    %18 = vector.broadcast %17 : vector<2x1xf32> to vector<2x128xf32>
    %19 = arith.addf %16, %18 : vector<2x128xf32>
    %20 = vector.extract_strided_slice %19 {offsets = [0, 0], sizes = [1, 128], strides = [1, 1]} : vector<2x128xf32> to vector<1x128xf32>
    %21 = vector.extract_strided_slice %19 {offsets = [1, 0], sizes = [1, 128], strides = [1, 1]} : vector<2x128xf32> to vector<1x128xf32>
    %22 = arith.maximumf %20, %21 : vector<1x128xf32>
    %23 = arith.subf %20, %22 : vector<1x128xf32>
    %24 = math.exp %23 : vector<1x128xf32>
    %25 = arith.subf %21, %22 : vector<1x128xf32>
    %26 = math.exp %25 : vector<1x128xf32>
    %27 = arith.addf %24, %26 : vector<1x128xf32>
    %28 = math.log %27 : vector<1x128xf32>
    %29 = arith.addf %22, %28 : vector<1x128xf32>
    %30 = vector.broadcast %29 : vector<1x128xf32> to vector<2x128xf32>
    %31 = arith.subf %19, %30 : vector<2x128xf32>
    %c0_17 = arith.constant 0 : index
    %c0_18 = arith.constant 0 : index
    %32 = vector.load %arg8[%c0_17, %c0_18] : memref<2x128xf32, #tpu.memory_space<vmem>>, vector<2x128xf32>
    tpu.vector_store %arg8[%c0_17, %c0_18], %31 {strides = array<i32>} : memref<2x128xf32, #tpu.memory_space<vmem>>, vector<2x128xf32>,
    return
  }
  func.func @transform_0(%arg0: i32) -> (i32, i32) {
    %c0_i32 = arith.constant 0 : i32
    %c0_i32_0 = arith.constant 0 : i32
    return %c0_i32, %arg0 : i32, i32
  }
  func.func @transform_1(%arg0: i32) -> (i32, i32) {
    %c0_i32 = arith.constant 0 : i32
    %c0_i32_0 = arith.constant 0 : i32
    %c0_i32_1 = arith.constant 0 : i32
    return %c0_i32, %c0_i32_0 : i32, i32
  }
  func.func @transform_2(%arg0: i32) -> (i32, i32) {
    %c0_i32 = arith.constant 0 : i32
    %c0_i32_0 = arith.constant 0 : i32
    %c0_i32_1 = arith.constant 0 : i32
    return %c0_i32, %c0_i32_0 : i32, i32
  }
  func.func @transform_3(%arg0: i32) -> (i32, i32) {
    %c0_i32 = arith.constant 0 : i32
    %c0_i32_0 = arith.constant 0 : i32
    %c0_i32_1 = arith.constant 0 : i32
    return %c0_i32, %c0_i32_0 : i32, i32
  }
  func.func @transform_4(%arg0: i32) -> (i32, i32) {
    %c0_i32 = arith.constant 0 : i32
    %c0_i32_0 = arith.constant 0 : i32
    %c0_i32_1 = arith.constant 0 : i32
    return %c0_i32, %c0_i32_0 : i32, i32
  }
  func.func @transform_5(%arg0: i32) -> (i32, i32) {
    %c0_i32 = arith.constant 0 : i32
    %c0_i32_0 = arith.constant 0 : i32
    %c0_i32_1 = arith.constant 0 : i32
    return %c0_i32, %c0_i32_0 : i32, i32
  }
  func.func @transform_6(%arg0: i32) -> (i32, i32) {
    %c0_i32 = arith.constant 0 : i32
    %c0_i32_0 = arith.constant 0 : i32
    %c0_i32_1 = arith.constant 0 : i32
    return %c0_i32, %c0_i32_0 : i32, i32
  }
  func.func @transform_7(%arg0: i32) -> (i32, i32) {
    %c0_i32 = arith.constant 0 : i32
    %c0_i32_0 = arith.constant 0 : i32
    return %c0_i32, %arg0 : i32, i32
  }
}

</mosaic_0001>

<bundles_post_ra>
// kernel: tpu_custom_call.1
= control target key start
LH: loop header
LB: loop body
LE: loop exit
PB: predicated region body
PF: predicated region fallthrough
CT: control target
= control target key end

     0   :  { %vm56_vm0 = vcmask 64512   ;;  %v296_v5 = vmov 0   ;;  %s407_s0 = inlined_call_operand.vmem [shape: f32[8,128], index: 0, kind: input, shape index: {}]   ;;  %s408_s1 = inlined_call_operand.vmem [shape: f32[32,8], index: 1, kind: input, shape index: {}]   ;;  %s409_s2 = inlined_call_operand.vmem [shape: f32[32,1], index: 2, kind: input, shape index: {}]   ;;  %s410_s3 = inlined_call_operand.vmem [shape: f32[32,32], index: 3, kind: input, shape index: {}]   ;;  %s411_s4 = inlined_call_operand.vmem [shape: f32[32,1], index: 4, kind: input, shape index: {}]   ;;  %s412_s5 = inlined_call_operand.vmem [shape: f32[2,32], index: 5, kind: input, shape index: {}]   ;;  %s413_s6 = inlined_call_operand.vmem [shape: f32[2,1], index: 6, kind: input, shape index: {}]   ;;  %s414_s7 = inlined_call_operand.hbm [shape: f32[2,128], index: 7, kind: output, shape index: {}]  }
   0x1   :  { %v27_v0 = vld [vmem:[%s407_s0] sm:$0xff]  ;;  %v31_v2 = vld [vmem:[%s408_s1 + $0x18] sm:$0xff]  ;;  %v33_v4 = vld [vmem:[%s409_s2 + $0x8] sm:$0xff]  ;;  %262 = vset.pattern.permute.xlu1 %v296_v5  ;;  %261 = vset.pattern.permute.xlu0 %v296_v5 }
   0x2   :  { %v28_v1 = vld [vmem:[%s408_s1] sm:$0xff]  ;;  %84 = vmatpush.msra.mxu0 %v27_v0  ;;  %254 = vmatpush.msra.mxu2 %v27_v0  ;;  %v35_v3 = vld [vmem:[%s409_s2 + $0x18] sm:$0xff] }
   0x3   :  { %245 = vmatmul.msk.f32.vlgmr.msra.gmra.mxu0 %vm56_vm0, %v28_v1  ;;  %248 = vmatmul.msk.f32.vlgmr.msra.gmra.mxu2 %vm56_vm0, %v31_v2 }
   0x4   :  { %12 = vsyncpa [#allocation3], 0  ;;  %53 = vperm.xlu0 %261, %v35_v3   ;;  %43 = vperm.xlu1 %262, %v33_v4   ;;  %v29_v6 = vld [vmem:[%s408_s1 + $0x8] sm:$0xff]  ;;  %v34_v7 = vld [vmem:[%s409_s2 + $0x10] sm:$0xff]  ;;  %vm130_vm1 = vcmask 261120   ;;  %s236_s12 = sshll.u32 %s414_s7, 4  ;;  %s237_s12 = int_to_ptr.hbm [resolvable:$true] %s236_s12 }
   0x5   :  { %263 = vset.pattern.permute.xlu2 %v296_v5  ;;  %v32_v8 = vld [vmem:[%s409_s2] sm:$0xff]  ;;  %v30_v9 = vld [vmem:[%s408_s1 + $0x10] sm:$0xff]  ;;  %v107_v10 = vld [vmem:[%s411_s4 + $0x8] sm:$0xff] }
   0x6   :  { %v106_v11 = vld [vmem:[%s411_s4] sm:$0xff]  ;;  %v109_v13 = vld [vmem:[%s411_s4 + $0x18] sm:$0xff]  ;;  %v108_v19 = vld [vmem:[%s411_s4 + $0x10] sm:$0xff] }
   0x7   :  { %127 = vperm.xlu2 %263, %v109_v13   ;;  %v177_v24 = vld [vmem:[%s413_s6] sm:$0x3]  ;;  %v104_v32 = vld [vmem:[%s410_s3 + $0x10] sm:$0xff]  ;;  %v103_v33 = vld [vmem:[%s410_s3 + $0x8] sm:$0xff] }
   0x8   :  { %v102_v31 = vld [vmem:[%s410_s3] sm:$0xff]  ;;  %v105_v34 = vld [vmem:[%s410_s3 + $0x18] sm:$0xff] }
   0x9   :  { %v176_v51 = vld [vmem:[%s412_s5] sm:$0x3]  ;;  %s297_s5 = smov [#allocation2]  }
   0xa   :  { %s234_s10 = sshll.u32 %s297_s5, 4  ;;  %s235_s10 = int_to_ptr.vmem [resolvable:$true] %s234_s10 }
   0xb   :  { %246 = vmatmul.msk.f32.gmra.mxu0 %vm56_vm0, %v29_v6 }
   0xc   :  { %48 = vperm.xlu0 %261, %v34_v7   ;;  %38 = vperm.xlu1 %262, %v32_v8  }
   0xf   :  { %122 = vperm.xlu2 %263, %v108_v19  }
  0x13   :  { %247 = vmatmul.msk.f32.gmra.mxu0 %vm56_vm0, %v30_v9 }
  0x14   :  { %117 = vperm.xlu0 %261, %v107_v10   ;;  %112 = vperm.xlu1 %262, %v106_v11  }
  0x17   :  { %180 = vperm.xlu2 %263, %v177_v24  }
  0x61   :  { %v128_v35 = vpop.permute.xlu2 %127 }
  0x69   :  { %v123_v38 = vpop.permute.xlu2 %122 }
  0x71   :  { %v181_v52 = vpop.permute.xlu2 %180 }
  0x76   :  { %v54_v14 = vpop.permute.xlu0 %53  ;;  %v44_v15 = vpop.permute.xlu1 %43 }
  0x7e   :  { %v49_v21 = vpop.permute.xlu0 %48  ;;  %v39_v22 = vpop.permute.xlu1 %38 }
  0x80   :  { %v86_v12 = vpop.f32.mrf.mxu0 }
  0x81   :  { %v87_v27 = vadd.f32 %v86_v12, %v39_v22 }
  0x83   :  { %v98_v30 = vmax.f32 %v87_v27, 0.0 }
  0x86   :  { %v95_v16 = vpop.f32.mrf.mxu2  ;;  %v118_v43 = vpop.permute.xlu0 %117 }
  0x87   :  { %v96_v18 = vadd.f32 %v95_v16, %v54_v14  ;;  %v113_v46 = vpop.permute.xlu1 %112 }
  0x88   :  { %v89_v17 = vpop.f32.mrf.mxu0 }
  0x89   :  { %v101_v20 = vmax.f32 %v96_v18, 0.0  ;;  %v90_v25 = vadd.f32 %v89_v17, %v44_v15 }
  0x8b   :  { %155 = vmatpush.msra.mxu1 %v101_v20  ;;  %255 = vmatpush.msra.mxu3 %v101_v20  ;;  %v99_v29 = vmax.f32 %v90_v25, 0.0 }
  0x90   :  { %v92_v23 = vpop.f32.mrf.mxu0 }
  0x91   :  { %v93_v26 = vadd.f32 %v92_v23, %v49_v21 }
  0x93   :  { %v100_v28 = vmax.f32 %v93_v26, 0.0 }
  0x95   :  { %156 = vmatpush.msra.mxu1 %v100_v28  ;;  %256 = vmatpush.msra.mxu3 %v100_v28 }
  0x97   :  { %157 = vmatpush.msra.mxu1 %v99_v29  ;;  %257 = vmatpush.msra.mxu3 %v99_v29 }
  0x99   :  { %158 = vmatpush.msra.mxu1 %v98_v30  ;;  %258 = vmatpush.msra.mxu3 %v98_v30 }
  0x9a   :  { %249 = vmatmul.msk.f32.vlgmr.msra.gmra.mxu1 %vm130_vm1, %v102_v31  ;;  %251 = vmatmul.msk.f32.vlgmr.msra.gmra.mxu3 %vm130_vm1, %v104_v32 }
  0xa2   :  { %250 = vmatmul.msk.f32.gmra.mxu1 %vm130_vm1, %v103_v33  ;;  %252 = vmatmul.msk.f32.gmra.mxu3 %vm130_vm1, %v105_v34 }
 0x117   :  { %v160_v36 = vpop.f32.mrf.mxu1 }
 0x118   :  { %v161_v47 = vadd.f32 %v160_v36, %v113_v46 }
 0x11a   :  { %v172_v50 = vmax.f32 %v161_v47, 0.0 }
 0x11d   :  { %v166_v37 = vpop.f32.mrf.mxu3 }
 0x11e   :  { %v167_v41 = vadd.f32 %v166_v37, %v123_v38 }
 0x11f   :  { %v163_v39 = vpop.f32.mrf.mxu1 }
 0x120   :  { %v164_v44 = vadd.f32 %v163_v39, %v118_v43  ;;  %v174_v48 = vmax.f32 %v167_v41, 0.0 }
 0x122   :  { %v173_v49 = vmax.f32 %v164_v44, 0.0 }
 0x125   :  { %v169_v40 = vpop.f32.mrf.mxu3 }
 0x126   :  { %v170_v42 = vadd.f32 %v169_v40, %v128_v35 }
 0x128   :  { %v175_v45 = vmax.f32 %v170_v42, 0.0 }
 0x12a   :  { %198 = vmatpush.msrb.mxu2 %v175_v45 }
 0x12c   :  { %199 = vmatpush.msrb.mxu2 %v174_v48 }
 0x12e   :  { %200 = vmatpush.msrb.mxu2 %v173_v49 }
 0x130   :  { %201 = vmatpush.msrb.mxu2 %v172_v50 }
 0x131   :  { %253 = vmatmul.msk.f32.vlgmr.msrb.gmra.mxu2 %vm130_vm1, %v176_v51 }
 0x1b4   :  { %v203_v53 = vpop.f32.mrf.mxu2 }
 0x1b5   :  { %v204_v54 = vadd.f32 %v203_v53, %v181_v52 }
 0x1b7   :  { %v207_v55 = vrot.slane %v204_v54, 1 }
 0x1b9   :  { %v209_v56 = vmax.f32 %v204_v54, %v207_v55 }
 0x1bb   :  { %v210_v57 = vsub.f32 %v204_v54, %v209_v56  ;;  %v214_v58 = vrot.slane %v209_v56, 7 }
 0x1bd   :  { %v216_v59 = vsub.f32 %v204_v54, %v214_v58  ;;  %v211_v60 = vmul.f32 1.442695, %v210_v57 }
 0x1bf   :  { %v217_v61 = vmul.f32 1.442695, %v216_v59 }
 0x1c1   :  { %264 = vpow2.f32 %v217_v61 }
 0x1c2   :  { %266 = vpow2.f32 %v211_v60 }
 0x1c7   :  { %v265_v62 = vpop.eup %264 }
 0x1c8   :  { %v220_v63 = vrot.slane %v265_v62, 1  ;;  %v267_v0 = vpop.eup %266 }
 0x1ca   :  { %v222_v1 = vadd.f32 %v267_v0, %v220_v63 }
 0x1cc   :  { %268 = vlog2.f32 %v222_v1 }
 0x1d2   :  { %v269_v2 = vpop.eup %268 }
 0x1d3   :  { %v224_v3 = vmul.f32 0.6931472, %v269_v2 }
 0x1d5   :  { %v225_v4 = vadd.f32 %v224_v3, %v209_v56 }
 0x1d7   :  { %v226_v5 = vperm.slane %v225_v4, 0 }
 0x1d9   :  { %v227_v6 = vsub.f32 %v204_v54, %v226_v5 }
 0x1db   :  { %228 = vst [vmem:[#allocation2] sm:$0x3] %v227_v6 }
 0x1dc   :  { %239 = dma.vmem_to_hbm [thread:$0]  %s235_s10, 32, %s237_s12, [#allocation3]  }
 0x1dd   :  { %294 = dma.done.wait [#allocation3], 32  }
 0x1de   :  { %295 = vsyncadd [#allocation3], 4294967264 }
 0x1df   :  { %244 = vsyncpa [#allocation3], 1 }

</bundles_post_ra>
